<compile_context>
chip_gen: v7x
topology: tpu7x:2x2x1
jax: 0.10.0
libtpu: 0.0.40
codegen_flags: <defaults>
</compile_context>

<pallas_src>
import numpy as np
import jax
import jax.numpy as jnp
from jax.experimental import pallas as pl
from jax.experimental.pallas import tpu as pltpu


def _gaussian_regression_kernel(x_ref, ctx_ref, w1x_ref, w1c_ref, b1_ref,
                                w2_ref, b2_ref, out_ref):
    """Dense head: Linear -> ReLU -> Linear, first layer split over (x, ctx).

    x_ref:   (Bblk, D)    object-level features for this block of rows
    ctx_ref: (Bblk, CD)   global context for this block of rows
    w1x_ref: (D, H)       rows [:D]   of the first Linear weight (pair with x)
    w1c_ref: (CD, H)      rows [D:]   of the first Linear weight (pair with ctx)
    b1_ref:  (1, H)       first Linear bias
    w2_ref:  (H, OP)      output Linear weight, zero-padded to OP=128 lanes
    b2_ref:  (1, OP)      output Linear bias, zero-padded to OP=128 lanes
    out_ref: (Bblk, OP)   lane-dense output slab; first 2*T columns are preds
    """
    h = (jnp.dot(x_ref[...], w1x_ref[...], preferred_element_type=jnp.float32)
         + jnp.dot(ctx_ref[...], w1c_ref[...], preferred_element_type=jnp.float32)
         + b1_ref[...])
    h = jnp.maximum(h, 0.0)                                   # ReLU
    o = jnp.dot(h, w2_ref[...], preferred_element_type=jnp.float32) + b2_ref[...]
    out_ref[...] = o.astype(out_ref.dtype)


def _round_up(v, m):
    return ((v + m - 1) // m) * m


def gaussian_regression_forward(x, context, params):
    """GaussianRegressionTask.forward (empty targets_dict) -> (preds, None).

    x:       (B, D)   global object-level features (x.ndim must be 2)
    context: (B, CD)  context tensor concatenated by the Dense net
    params:  (w1, b1, w2, b2) with w1: (D+CD, H), b1: (H,), w2: (H, 2*T), b2: (2*T,)
    """
    B, D = x.shape
    CD = context.shape[-1]
    w1, b1, w2, b2 = params
    H = w1.shape[1]
    O = w2.shape[1]
    assert w1.shape[0] == D + CD
    assert O % 2 == 0  # means + variances (2 * len(targets))

    # Split the first Linear so the kernel never materializes concat(x, ctx).
    # PyTorch's Dense does cat([x, context], -1): rows [:D] of w1 pair with x,
    # rows [D:] pair with context.
    w1x = w1[:D]
    w1c = w1[D:]
    b1r = b1.reshape(1, H)

    # Lane-dense output: pad the tiny output width (2*T) to a multiple of 128
    # with zero columns (static, host-side); slice the real columns afterwards.
    OP = _round_up(O, 128)
    w2p = jnp.zeros((H, OP), w2.dtype).at[:, :O].set(w2)
    b2p = jnp.zeros((1, OP), b2.dtype).at[:, :O].set(b2.reshape(1, O))

    # Fold batch rows into blocks of Bblk (multiple of 8 sublanes); pad B so it
    # divides evenly. Padded rows produce garbage that is sliced away below.
    Bblk = min(256, _round_up(B, 8))
    Bp = _round_up(B, Bblk)
    if Bp != B:
        x = jnp.pad(x, ((0, Bp - B), (0, 0)))
        context = jnp.pad(context, ((0, Bp - B), (0, 0)))

    out = pl.pallas_call(
        _gaussian_regression_kernel,
        out_shape=jax.ShapeDtypeStruct((Bp, OP), jnp.float32),
        grid=(Bp // Bblk,),
        in_specs=[
            pl.BlockSpec((Bblk, D), lambda i: (i, 0)),
            pl.BlockSpec((Bblk, CD), lambda i: (i, 0)),
            pl.BlockSpec((D, H), lambda i: (0, 0)),    # resident across steps
            pl.BlockSpec((CD, H), lambda i: (0, 0)),   # resident across steps
            pl.BlockSpec((1, H), lambda i: (0, 0)),    # resident across steps
            pl.BlockSpec((H, OP), lambda i: (0, 0)),   # resident across steps
            pl.BlockSpec((1, OP), lambda i: (0, 0)),   # resident across steps
        ],
        out_specs=pl.BlockSpec((Bblk, OP), lambda i: (i, 0)),
        compiler_params=pltpu.CompilerParams(dimension_semantics=("parallel",)),
    )(x, context, w1x, w1c, b1r, w2p, b2p)

    preds = out[:B, :O]   # static slice, no gather

    # TODO(synk): targets path (get_targets scaling, softplus(variances),
    #             Gaussian NLL nan_loss * weight) not implemented; with an
    #             empty targets_dict the PyTorch forward returns loss=None.
    loss = None
    return preds, loss


def _reference(x, context, params):
    w1, b1, w2, b2 = params
    feat = jnp.concatenate([x, context], axis=-1)
    h = jnp.maximum(feat @ w1 + b1, 0.0)
    return h @ w2 + b2


if __name__ == "__main__":
    # Small shapes consistent with the module: (B, D) global features + context,
    # Dense(input=D+CD, hidden=[H], output=2*T) with 2 regression targets.
    B, D, CD, H, T = 16, 32, 16, 64, 2
    O = 2 * T

    key = jax.random.PRNGKey(0)
    kx, kc, kw1, kb1, kw2, kb2 = jax.random.split(key, 6)

    x = jax.random.normal(kx, (B, D), dtype=jnp.float32)
    context = jax.random.normal(kc, (B, CD), dtype=jnp.float32)

    in_dim = D + CD
    w1 = jax.random.normal(kw1, (in_dim, H), dtype=jnp.float32) * (1.0 / np.sqrt(in_dim))
    b1 = jax.random.normal(kb1, (H,), dtype=jnp.float32) * 0.01
    w2 = jax.random.normal(kw2, (H, O), dtype=jnp.float32) * (1.0 / np.sqrt(H))
    b2 = jax.random.normal(kb2, (O,), dtype=jnp.float32) * 0.01
    params = (w1, b1, w2, b2)

    preds, loss = gaussian_regression_forward(x, context, params)
    preds = jax.block_until_ready(preds)

    ref = _reference(x, context, params)
    assert preds.shape == (B, O), preds.shape
    assert loss is None
    np.testing.assert_allclose(np.asarray(preds), np.asarray(ref), rtol=1e-5, atol=1e-5)

    # Sanity check: the preds tensor splits evenly into means / (pre-softplus)
    # variances, as GaussianRegressionTask requires.
    means, variances = np.split(np.asarray(preds), 2, axis=-1)
    assert means.shape == variances.shape == (B, T)

    print("KERNEL_OK")
</pallas_src>

<mosaic_0001>
module attributes {stable_mosaic.version = 11 : i64} {
  func.func @_gaussian_regression_kernel(%arg0: i32, %arg1: memref<16x32xf32, #tpu.memory_space<vmem>>, %arg2: memref<16x16xf32, #tpu.memory_space<vmem>>, %arg3: memref<32x64xf32, #tpu.memory_space<vmem>>, %arg4: memref<16x64xf32, #tpu.memory_space<vmem>>, %arg5: memref<1x64xf32, #tpu.memory_space<vmem>>, %arg6: memref<64x128xf32, #tpu.memory_space<vmem>>, %arg7: memref<1x128xf32, #tpu.memory_space<vmem>>, %arg8: memref<16x128xf32, #tpu.memory_space<vmem>>) attributes {dimension_semantics = [#tpu.dimension_semantics<parallel>], iteration_bounds = array<i64: 1>, scalar_prefetch = 0 : i64, scratch_operands = 0 : i64, tpu.core_type = #tpu.core_type<tc>, window_params = [{transform_indices = @transform_0, window_bounds = array<i64: 16, 32>}, {transform_indices = @transform_1, window_bounds = array<i64: 16, 16>}, {pipeline_mode = #tpu.pipeline_mode<synchronous>, transform_indices = @transform_2, window_bounds = array<i64: 32, 64>}, {pipeline_mode = #tpu.pipeline_mode<synchronous>, transform_indices = @transform_3, window_bounds = array<i64: 16, 64>}, {pipeline_mode = #tpu.pipeline_mode<synchronous>, transform_indices = @transform_4, window_bounds = array<i64: 1, 64>}, {pipeline_mode = #tpu.pipeline_mode<synchronous>, transform_indices = @transform_5, window_bounds = array<i64: 64, 128>}, {pipeline_mode = #tpu.pipeline_mode<synchronous>, transform_indices = @transform_6, window_bounds = array<i64: 1, 128>}, {transform_indices = @transform_7, window_bounds = array<i64: 16, 128>}]} {
    %c0 = arith.constant 0 : index
    %c0_0 = arith.constant 0 : index
    %0 = vector.load %arg1[%c0, %c0_0] : memref<16x32xf32, #tpu.memory_space<vmem>>, vector<16x32xf32>
    %c0_1 = arith.constant 0 : index
    %c0_2 = arith.constant 0 : index
    %1 = vector.load %arg3[%c0_1, %c0_2] : memref<32x64xf32, #tpu.memory_space<vmem>>, vector<32x64xf32>
    %cst = arith.constant dense<0.000000e+00> : vector<16x64xf32>
    %2 = tpu.matmul %0, %1, %cst {dimension_numbers = #tpu.dot_dimension_numbers<[1], [0], [0], [1], [0, 0, 1, 1], [], []>} : vector<16x32xf32>, vector<32x64xf32>, vector<16x64xf32> -> vector<16x64xf32>
    %c0_3 = arith.constant 0 : index
    %c0_4 = arith.constant 0 : index
    %3 = vector.load %arg2[%c0_3, %c0_4] : memref<16x16xf32, #tpu.memory_space<vmem>>, vector<16x16xf32>
    %c0_5 = arith.constant 0 : index
    %c0_6 = arith.constant 0 : index
    %4 = vector.load %arg4[%c0_5, %c0_6] : memref<16x64xf32, #tpu.memory_space<vmem>>, vector<16x64xf32>
    %cst_7 = arith.constant dense<0.000000e+00> : vector<16x64xf32>
    %5 = tpu.matmul %3, %4, %cst_7 {dimension_numbers = #tpu.dot_dimension_numbers<[1], [0], [0], [1], [0, 0, 1, 1], [], []>} : vector<16x16xf32>, vector<16x64xf32>, vector<16x64xf32> -> vector<16x64xf32>
    %6 = arith.addf %2, %5 : vector<16x64xf32>
    %c0_8 = arith.constant 0 : index
    %c0_9 = arith.constant 0 : index
    %7 = vector.load %arg5[%c0_8, %c0_9] : memref<1x64xf32, #tpu.memory_space<vmem>>, vector<1x64xf32>
    %8 = vector.broadcast %7 : vector<1x64xf32> to vector<16x64xf32>
    %9 = arith.addf %6, %8 : vector<16x64xf32>
    %cst_10 = arith.constant 0.000000e+00 : f32
    %10 = vector.broadcast %cst_10 : f32 to vector<16x64xf32>
    %11 = arith.maximumf %9, %10 : vector<16x64xf32>
    %c0_11 = arith.constant 0 : index
    %c0_12 = arith.constant 0 : index
    %12 = vector.load %arg6[%c0_11, %c0_12] : memref<64x128xf32, #tpu.memory_space<vmem>>, vector<64x128xf32>
    %cst_13 = arith.constant dense<0.000000e+00> : vector<16x128xf32>
    %13 = tpu.matmul %11, %12, %cst_13 {dimension_numbers = #tpu.dot_dimension_numbers<[1], [0], [0], [1], [0, 0, 1, 1], [], []>} : vector<16x64xf32>, vector<64x128xf32>, vector<16x128xf32> -> vector<16x128xf32>
    %c0_14 = arith.constant 0 : index
    %c0_15 = arith.constant 0 : index
    %14 = vector.load %arg7[%c0_14, %c0_15] : memref<1x128xf32, #tpu.memory_space<vmem>>, vector<1x128xf32>
    %15 = vector.broadcast %14 : vector<1x128xf32> to vector<16x128xf32>
    %16 = arith.addf %13, %15 : vector<16x128xf32>
    %c0_16 = arith.constant 0 : index
    %c0_17 = arith.constant 0 : index
    %17 = vector.load %arg8[%c0_16, %c0_17] : memref<16x128xf32, #tpu.memory_space<vmem>>, vector<16x128xf32>
    tpu.vector_store %arg8[%c0_16, %c0_17], %16 {strides = array<i32>} : memref<16x128xf32, #tpu.memory_space<vmem>>, vector<16x128xf32>,
    return
  }
  func.func @transform_0(%arg0: i32) -> (i32, i32) {
    %c0_i32 = arith.constant 0 : i32
    %c0_i32_0 = arith.constant 0 : i32
    return %arg0, %c0_i32 : i32, i32
  }
  func.func @transform_1(%arg0: i32) -> (i32, i32) {
    %c0_i32 = arith.constant 0 : i32
    %c0_i32_0 = arith.constant 0 : i32
    return %arg0, %c0_i32 : i32, i32
  }
  func.func @transform_2(%arg0: i32) -> (i32, i32) {
    %c0_i32 = arith.constant 0 : i32
    %c0_i32_0 = arith.constant 0 : i32
    %c0_i32_1 = arith.constant 0 : i32
    return %c0_i32, %c0_i32_0 : i32, i32
  }
  func.func @transform_3(%arg0: i32) -> (i32, i32) {
    %c0_i32 = arith.constant 0 : i32
    %c0_i32_0 = arith.constant 0 : i32
    %c0_i32_1 = arith.constant 0 : i32
    return %c0_i32, %c0_i32_0 : i32, i32
  }
  func.func @transform_4(%arg0: i32) -> (i32, i32) {
    %c0_i32 = arith.constant 0 : i32
    %c0_i32_0 = arith.constant 0 : i32
    %c0_i32_1 = arith.constant 0 : i32
    return %c0_i32, %c0_i32_0 : i32, i32
  }
  func.func @transform_5(%arg0: i32) -> (i32, i32) {
    %c0_i32 = arith.constant 0 : i32
    %c0_i32_0 = arith.constant 0 : i32
    %c0_i32_1 = arith.constant 0 : i32
    return %c0_i32, %c0_i32_0 : i32, i32
  }
  func.func @transform_6(%arg0: i32) -> (i32, i32) {
    %c0_i32 = arith.constant 0 : i32
    %c0_i32_0 = arith.constant 0 : i32
    %c0_i32_1 = arith.constant 0 : i32
    return %c0_i32, %c0_i32_0 : i32, i32
  }
  func.func @transform_7(%arg0: i32) -> (i32, i32) {
    %c0_i32 = arith.constant 0 : i32
    %c0_i32_0 = arith.constant 0 : i32
    return %arg0, %c0_i32 : i32, i32
  }
}

</mosaic_0001>

<bundles_post_ra>
// kernel: tpu_custom_call.1
= control target key start
LH: loop header
LB: loop body
LE: loop exit
PB: predicated region body
PF: predicated region fallthrough
CT: control target
= control target key end

     0   :  { %12 = vsyncpa [#allocation3], 0  ;;  %s803_s0 = inlined_call_operand.hbm [shape: f32[16,32], index: 0, kind: input, shape index: {}]   ;;  %s804_s1 = inlined_call_operand.hbm [shape: f32[16,16], index: 1, kind: input, shape index: {}]   ;;  %s805_s2 = inlined_call_operand.hbm [shape: f32[32,64], index: 2, kind: input, shape index: {}]   ;;  %s806_s3 = inlined_call_operand.hbm [shape: f32[16,64], index: 3, kind: input, shape index: {}]   ;;  %s807_s4 = inlined_call_operand.vmem [shape: f32[1,64], index: 4, kind: input, shape index: {}]   ;;  %s808_s5 = inlined_call_operand.hbm [shape: f32[64,128], index: 5, kind: input, shape index: {}]   ;;  %s809_s6 = inlined_call_operand.vmem [shape: f32[1,128], index: 6, kind: input, shape index: {}]   ;;  %s810_s7 = inlined_call_operand.hbm [shape: f32[16,128], index: 7, kind: output, shape index: {}]  }
   0x1   :  { %13 = vsyncpa [#allocation6], 0 }
   0x2   :  { %14 = vsyncpa [#allocation9], 0 }
   0x3   :  { %15 = vsyncpa [#allocation4], 0  ;;  %s641_s24 = smov [#allocation5]   ;;  %s642_s26 = smov [#allocation8]  }
   0x4   :  { %s33_s25 = sshll.u32 %s641_s24, 4  ;;  %s57_s27 = sshll.u32 %s642_s26, 4  ;;  %s34_s25 = int_to_ptr.vmem [resolvable:$true] %s33_s25  ;;  %s689_s27 = int_to_ptr.vmem [resolvable:$true] %s57_s27 }
   0x5   :  { %s501_s30 = scalar_lea.hbm %s804_s1, 256 }
   0x6   :  { %p502_p0 = scmp.ne.s32.totalorder %s804_s1, %s501_s30  ;;  %p505_p1 = scmp.lt.u32.totalorder %s501_s30, %s804_s1 }
   0x8   :  { %p507_p2 = pnand %p505_p1, %p502_p0 }
   0xa   :  { %510 = shalt.err (!%p507_p2)
}
   0xb   :  { %s511_s12 = scalar_lea.vmem %s34_s25, 256  ;;  %p516_p4 = scmp.lt.s32.totalorder %s34_s25, %s34_s25 }
   0xc   :  { %p512_p3 = scmp.ne.s32.totalorder %s34_s25, %s511_s12  ;;  %p517_p5 = scmp.lt.s32.totalorder %s511_s12, %s511_s12 }
   0xe   :  { %p518_p6 = por %p517_p5, %p516_p4 }
  0x10   :  { %p519_p7 = pnand %p518_p6, %p512_p3 }
  0x12   :  { %522 = shalt.err (!%p519_p7)
}
  0x13   :  { %s643_s13 = smov 128   ;;  %s644_s14 = smov 8  }
  0x14   :  { %39 = dma.hbm_to_vmem [thread:$0]  %s804_s1, 256, %s34_s25, [#allocation6], %s643_s13, %s643_s13, %s644_s14  }
  0x15   :  { %s523_s19 = scalar_lea.hbm %s806_s3, 256 }
  0x16   :  { %p524_p8 = scmp.ne.s32.totalorder %s806_s3, %s523_s19  ;;  %p527_p9 = scmp.lt.u32.totalorder %s523_s19, %s806_s3 }
  0x18   :  { %p529_p10 = pnand %p527_p9, %p524_p8 }
  0x1a   :  { %532 = shalt.err (!%p529_p10)
}
  0x1b   :  { %s533_s24 = scalar_lea.vmem %s689_s27, 256  ;;  %p538_p12 = scmp.lt.s32.totalorder %s689_s27, %s689_s27 }
  0x1c   :  { %p534_p11 = scmp.ne.s32.totalorder %s689_s27, %s533_s24  ;;  %p539_p13 = scmp.lt.s32.totalorder %s533_s24, %s533_s24 }
  0x1e   :  { %p540_p0 = por %p539_p13, %p538_p12 }
  0x20   :  { %p541_p1 = pnand %p540_p0, %p534_p11 }
  0x22   :  { %544 = shalt.err (!%p541_p1)
}
  0x23   :  { %63 = dma.hbm_to_vmem [thread:$0]  %s806_s3, 256, %s689_s27, [#allocation9], %s643_s13, %s643_s13, %s644_s14  }
  0x24   :  { %s645_s26 = smov [#allocation2]   ;;  %s646_s29 = smov [#allocation7]  }
  0x25   :  { %s21_s28 = sshll.u32 %s645_s26, 4  ;;  %s45_s30 = sshll.u32 %s646_s29, 4  ;;  %s22_s28 = int_to_ptr.vmem [resolvable:$true] %s21_s28  ;;  %s726_s30 = int_to_ptr.vmem [resolvable:$true] %s45_s30 }
  0x26   :  { %s545_s10 = scalar_lea.hbm %s803_s0, 256 }
  0x27   :  { %p546_p2 = scmp.ne.s32.totalorder %s803_s0, %s545_s10  ;;  %p549_p3 = scmp.lt.u32.totalorder %s545_s10, %s803_s0 }
  0x29   :  { %p551_p4 = pnand %p549_p3, %p546_p2 }
  0x2b   :  { %554 = shalt.err (!%p551_p4)
}
  0x2c   :  { %s555_s3 = scalar_lea.vmem %s22_s28, 256  ;;  %p560_p6 = scmp.lt.s32.totalorder %s22_s28, %s22_s28 }
  0x2d   :  { %p556_p5 = scmp.ne.s32.totalorder %s22_s28, %s555_s3  ;;  %p561_p7 = scmp.lt.s32.totalorder %s555_s3, %s555_s3 }
  0x2f   :  { %p562_p8 = por %p561_p7, %p560_p6 }
  0x31   :  { %p563_p9 = pnand %p562_p8, %p556_p5 }
  0x33   :  { %566 = shalt.err (!%p563_p9)
}
  0x34   :  { %27 = dma.hbm_to_vmem [thread:$0]  %s803_s0, 256, %s22_s28, [#allocation3], %s643_s13, %s643_s13, %s644_s14  }
  0x35   :  { %s567_s20 = scalar_lea.hbm %s805_s2, 512 }
  0x36   :  { %p568_p10 = scmp.ne.s32.totalorder %s805_s2, %s567_s20  ;;  %p571_p11 = scmp.lt.u32.totalorder %s567_s20, %s805_s2 }
  0x38   :  { %p573_p12 = pnand %p571_p11, %p568_p10 }
  0x3a   :  { %576 = shalt.err (!%p573_p12)
}
  0x3b   :  { %s577_s1 = scalar_lea.vmem %s726_s30, 512  ;;  %p582_p0 = scmp.lt.s32.totalorder %s726_s30, %s726_s30 }
  0x3c   :  { %p578_p13 = scmp.ne.s32.totalorder %s726_s30, %s577_s1  ;;  %p583_p1 = scmp.lt.s32.totalorder %s577_s1, %s577_s1 }
  0x3e   :  { %p584_p2 = por %p583_p1, %p582_p0 }
  0x40   :  { %p585_p3 = pnand %p584_p2, %p578_p13 }
  0x42   :  { %588 = shalt.err (!%p585_p3)
}
  0x43   :  { %51 = dma.hbm_to_vmem [thread:$0]  %s805_s2, 512, %s726_s30, [#allocation6], %s643_s13, %s643_s13, %s644_s14  }
  0x44   :  { %s647_s26 = smov [#allocation10]   ;;  %s589_s9 = scalar_lea.hbm %s808_s5, 1024 }
  0x45   :  { %s71_s28 = sshll.u32 %s647_s26, 4  ;;  %p590_p4 = scmp.ne.s32.totalorder %s808_s5, %s589_s9  ;;  %s72_s28 = int_to_ptr.vmem [resolvable:$true] %s71_s28 }
  0x46   :  { %p593_p5 = scmp.lt.u32.totalorder %s589_s9, %s808_s5 }
  0x48   :  { %p595_p6 = pnand %p593_p5, %p590_p4 }
  0x4a   :  { %598 = shalt.err (!%p595_p6)
}
  0x4b   :  { %s599_s16 = scalar_lea.vmem %s72_s28, 1024  ;;  %p604_p8 = scmp.lt.s32.totalorder %s72_s28, %s72_s28 }
  0x4c   :  { %p600_p7 = scmp.ne.s32.totalorder %s72_s28, %s599_s16  ;;  %p605_p9 = scmp.lt.s32.totalorder %s599_s16, %s599_s16 }
  0x4e   :  { %p606_p10 = por %p605_p9, %p604_p8 }
  0x50   :  { %p607_p11 = pnand %p606_p10, %p600_p7 }
  0x52   :  { %610 = shalt.err (!%p607_p11)
}
  0x53   :  { %77 = dma.hbm_to_vmem [thread:$0]  %s808_s5, 1024, %s72_s28, [#allocation9], %s643_s13, %s643_s13, %s644_s14  }
  0x54   :  { %633 = dma.done.wait [#allocation3], 256  }
  0x55   :  { %634 = vsyncadd [#allocation3], 4294967040 }
  0x56   :  { %635 = dma.done.wait [#allocation6], 768  }
  0x57   :  { %636 = vsyncadd [#allocation6], 4294966528 }
  0x58   :  { %637 = dma.done.wait [#allocation9], 1280  }
  0x59   :  { %638 = vsyncadd [#allocation9], 4294966016  ;;  %vm105_vm0 = vcmask 130048   ;;  %v103_v0 = vld [vmem:[#allocation8] sm:$0xff]  ;;  %v104_v1 = vld [vmem:[#allocation8 + $0x8] sm:$0xff]  ;;  %vm187_vm1 = vcmask 261120  }
  0x5a   :  { %v101_v2 = vld [vmem:[#allocation5] sm:$0xff]  ;;  %v463_v3 = vpack.c.bf16 %v104_v1, %v103_v0  ;;  %v97_v4 = vld [vmem:[#allocation7] sm:$0xff]  ;;  %v98_v5 = vld [vmem:[#allocation7 + $0x8] sm:$0xff]  ;;  %vm295_vm2 = vcmask 523264   ;;  %s648_s18 = smov [#allocation11]  }
  0x5b   :  { %430 = vmatprep.mubr.msk.f32.mxu0 %vm105_vm0, %v101_v2  ;;  %v467_v6 = vpack.c.bf16 %v98_v5, %v97_v4  ;;  %v99_v7 = vld [vmem:[#allocation7 + $0x10] sm:$0xff]  ;;  %v100_v8 = vld [vmem:[#allocation7 + $0x18] sm:$0xff]  ;;  %v282_v13 = vld [vmem:[#allocation10 + $0x10] sm:$0xff]  ;;  %s384_s19 = sshll.u32 %s648_s18, 4  ;;  %s385_s19 = int_to_ptr.vmem [resolvable:$true] %s384_s19 }
  0x5c   :  { %464 = vmatprep.subr.bf16.mxu0 %v463_v3  ;;  %v280_v9 = vld [vmem:[#allocation10] sm:$0xff]  ;;  %v281_v10 = vld [vmem:[#allocation10 + $0x8] sm:$0xff]  ;;  %v283_v14 = vld [vmem:[#allocation10 + $0x18] sm:$0xff]  ;;  %v471_v15 = vpack.c.bf16 %v100_v8, %v99_v7  ;;  %p616_p13 = scmp.lt.s32.totalorder %s385_s19, %s385_s19 }
  0x5d   :  { %466 = vmatpush3.bf16.msra.mxu0 %v463_v3  ;;  %v102_v11 = vld [vmem:[#allocation5 + $0x8] sm:$0xff]  ;;  %v475_v12 = vpack.c.bf16 %v281_v10, %v280_v9  ;;  %v95_v16 = vld [vmem:[#allocation2] sm:$0xff]  ;;  %v479_v17 = vpack.c.bf16 %v283_v14, %v282_v13  ;;  %v284_v18 = vld [vmem:[#allocation10 + $0x20] sm:$0xff] }
  0x5e   :  { %468 = vmatprep.subr.bf16.mxu0 %v467_v6  ;;  %v285_v19 = vld [vmem:[#allocation10 + $0x28] sm:$0xff]  ;;  %v96_v21 = vld [vmem:[#allocation2 + $0x8] sm:$0xff]  ;;  %v286_v22 = vld [vmem:[#allocation10 + $0x30] sm:$0xff] }
  0x5f   :  { %476 = vmatprep.subr.bf16.mxu1 %v475_v12  ;;  %v483_v20 = vpack.c.bf16 %v285_v19, %v284_v18  ;;  %v287_v23 = vld [vmem:[#allocation10 + $0x38] sm:$0xff]  ;;  %v402_v25 = vld [vmem:[%s807_s4] ss:$0 sm:$0xff]  ;;  %s611_s4 = scalar_lea.vmem %s385_s19, 256 }
  0x60   :  { %431 = vmatmul.mubr.msk.f32.vlgmr.msra.gmra.mrb[0].mxu0 %vm105_vm0, %v102_v11  ;;  %478 = vmatpush3.bf16.msra.mxu1 %v475_v12  ;;  %v487_v24 = vpack.c.bf16 %v287_v23, %v286_v22  ;;  %v403_v32 = vld [vmem:[%s809_s6] ss:$0 sm:$0xff]  ;;  %p612_p12 = scmp.ne.s32.totalorder %s385_s19, %s611_s4  ;;  %p617_p0 = scmp.lt.s32.totalorder %s611_s4, %s611_s4 }
  0x61   :  { %470 = vmatpush3.bf16.msra.mxu0 %v467_v6  ;;  %441 = vmatprep.mubr.msk.f32.mxu0 %vm187_vm1, %v95_v16 }
  0x62   :  { %472 = vmatprep.subr.bf16.mxu0 %v471_v15  ;;  %480 = vmatprep.subr.bf16.mxu1 %v479_v17  ;;  %p618_p1 = por %p617_p0, %p616_p13 }
  0x64   :  { %482 = vmatpush3.bf16.msra.mxu1 %v479_v17  ;;  %p619_p2 = pnand %p618_p1, %p612_p12 }
  0x65   :  { %474 = vmatpush3.bf16.msra.mxu0 %v471_v15  ;;  %484 = vmatprep.subr.bf16.mxu1 %v483_v20 }
  0x68   :  { %442 = vmatmul.mubr.msk.f32.vlgmr.msra.gmra.mrb[0].mxu0 %vm187_vm1, %v96_v21  ;;  %486 = vmatpush3.bf16.msra.mxu1 %v483_v20 }
  0x69   :  { %488 = vmatprep.subr.bf16.mxu1 %v487_v24 }
  0x6c   :  { %490 = vmatpush3.bf16.msra.mxu1 %v487_v24 }
 0x13b   :  { %v443_v26 = vpop.f32.mrb[0].mxu0 }
 0x13c   :  { %v277_v27 = vadd.f32 %v443_v26, %v402_v25  ;;  %v260_v28 = vpop.f32.mrb[1].mxu0 }
 0x13d   :  { %v276_v29 = vadd.f32 %v402_v25, %v260_v28 }
 0x13e   :  { %v279_v31 = vmax.f32 %v277_v27, 0.0 }
 0x13f   :  { %v278_v30 = vmax.f32 %v276_v29, 0.0 }
 0x141   :  { %460 = vmatprep.mubr.msk.f32.mxu1 %vm295_vm2, %v278_v30 }
 0x142   :  { %461 = vmatmul.mubr.msk.f32.vlgmr.msra.gmra.mrb[0].mxu1 %vm295_vm2, %v279_v31 }
 0x215   :  { %v462_v33 = vpop.f32.mrb[0].mxu1 }
 0x216   :  { %v374_v34 = vadd.f32 %v462_v33, %v403_v32  ;;  %v368_v35 = vpop.f32.mrb[1].mxu1 }
 0x217   :  { %v369_v36 = vadd.f32 %v403_v32, %v368_v35 }
 0x218   :  { %378 = vst [vmem:[#allocation11 + $0x8] sm:$0xff] %v374_v34 }
 0x219   :  { %377 = vst [vmem:[#allocation11] sm:$0xff] %v369_v36 }
 0x21a   :  { %622 = shalt.err (!%p619_p2)
}
 0x21b   :  { %s623_s6 = scalar_lea.hbm %s810_s7, 256 }
 0x21c   :  { %p624_p3 = scmp.ne.s32.totalorder %s810_s7, %s623_s6  ;;  %p627_p4 = scmp.lt.u32.totalorder %s623_s6, %s810_s7 }
 0x21e   :  { %p629_p5 = pnand %p627_p4, %p624_p3 }
 0x220   :  { %632 = shalt.err (!%p629_p5)
}
 0x221   :  { %390 = dma.vmem_to_hbm [thread:$0]  %s385_s19, 256, %s810_s7, [#allocation4], %s643_s13, %s643_s13, %s644_s14  }
 0x222   :  { %639 = dma.done.wait [#allocation4], 256  }
 0x223   :  { %640 = vsyncadd [#allocation4], 4294967040 }
 0x224   :  { %394 = vsyncpa [#allocation3], 1 }
 0x225   :  { %395 = vsyncpa [#allocation6], 1 }
 0x226   :  { %396 = vsyncpa [#allocation9], 1 }
 0x227   :  { %397 = vsyncpa [#allocation4], 1 }

</bundles_post_ra>
